<compile_context>
chip_gen: v5e
topology: v5e:2x2
jax: 0.10.0
libtpu: 0.0.40
codegen_flags: <defaults>
</compile_context>

<pallas_src>
import jax
import jax.numpy as jnp
from jax.experimental import pallas as pl
from jax.experimental.pallas import tpu as pltpu


def _round_up(n, m):
    return (n + m - 1) // m * m


def mlp_kernel(x_ref, w1_ref, b1_ref, w2_ref, b2_ref, o_ref):
    # x_ref : (TB, d_in) f32   (unpadded activations; cast to bf16 on the VPU)
    # w1_ref: (d_in, H)  bf16  (hidden lane-padded to H = round_up(hidden, 128))
    # b1_ref: (1, H)     f32
    # w2_ref: (H, C)     bf16  (rows >= hidden are zero -> exact)
    # b2_ref: (1, C)     f32
    # o_ref : (TB, C)    f32
    x_bf = x_ref[...].astype(jnp.bfloat16)
    h = jnp.dot(x_bf, w1_ref[...], preferred_element_type=jnp.float32)   # MXU
    h = jnp.maximum(h + b1_ref[...], 0.0)                                # VPU bias + ReLU (f32)
    o = jnp.dot(h.astype(jnp.bfloat16), w2_ref[...],
                preferred_element_type=jnp.float32)                      # MXU
    o_ref[...] = o + b2_ref[...]                                         # f32 bias epilogue


def pack_params(w1, b1, w2, b2):
    """One-time packing: lane-pad hidden dim, cast weights to bf16, keep f32 biases.

    Zero padding is mathematically exact through ReLU and the second matmul.
    """
    d_in, hidden = w1.shape
    C = w2.shape[1]
    H = _round_up(hidden, 128)

    w1_bf = jnp.zeros((d_in, H), jnp.bfloat16).at[:, :hidden].set(
        w1.astype(jnp.bfloat16))
    w2_bf = jnp.zeros((H, C), jnp.bfloat16).at[:hidden, :].set(
        w2.astype(jnp.bfloat16))
    b1_pad = jnp.zeros((1, H), jnp.float32).at[:, :hidden].set(
        jnp.reshape(b1, (1, -1)).astype(jnp.float32))
    b2_f32 = jnp.reshape(b2, (1, -1)).astype(jnp.float32)

    return {
        "w1_bf": w1_bf, "b1": b1_pad, "w2_bf": w2_bf, "b2": b2_f32,
        "raw": (w1, jnp.reshape(b1, (1, -1)), w2, jnp.reshape(b2, (1, -1))),
        "dims": (d_in, hidden, C),
    }


def simple_nn_forward(x, params, *, tb_max=1024, min_pallas_batch=256,
                      force_pallas=False):
    """relu(x @ w1 + b1) @ w2 + b2, matching the PyTorch SimpleNN forward."""
    B, d_in = x.shape
    d_in_p, _hidden, C = params["dims"]
    assert d_in == d_in_p, (d_in, d_in_p)

    # Small-batch fast path: launch + wrapper overhead dominates, XLA's fused
    # GEMM path wins on every TPU generation.
    if B < min_pallas_batch and not force_pallas:
        w1, b1, w2, b2 = params["raw"]
        return jnp.maximum(x @ w1 + b1, 0.0) @ w2 + b2

    H = params["w1_bf"].shape[1]

    # Batch tile: split into >=2 tiles when possible so v7x's 2 TensorCores both
    # get work; cap at tb_max rows (fewer grid-step overheads on v6e/v5e).
    if B >= 32:
        tb_target = _round_up(pl.cdiv(B, 2), 16)
    else:
        tb_target = _round_up(B, 8)
    TB = min(tb_max, tb_target)
    num_tiles = pl.cdiv(B, TB)

    out = pl.pallas_call(
        mlp_kernel,
        out_shape=jax.ShapeDtypeStruct((B, C), jnp.float32),
        grid=(num_tiles,),
        in_specs=[
            pl.BlockSpec((TB, d_in), lambda i: (i, 0)),   # batch-tiled activations
            pl.BlockSpec((d_in, H), lambda i: (0, 0)),    # VMEM-resident weights
            pl.BlockSpec((1, H), lambda i: (0, 0)),       # f32 bias 1
            pl.BlockSpec((H, C), lambda i: (0, 0)),       # VMEM-resident weights
            pl.BlockSpec((1, C), lambda i: (0, 0)),       # f32 bias 2
        ],
        out_specs=pl.BlockSpec((TB, C), lambda i: (i, 0)),
        compiler_params=pltpu.CompilerParams(
            dimension_semantics=("parallel",)),
    )(x, params["w1_bf"], params["b1"], params["w2_bf"], params["b2"])
    return out


def init_params(key, input_size, num_classes, hidden=16):
    # PyTorch nn.Linear default init: U(-1/sqrt(fan_in), 1/sqrt(fan_in)).
    k1, k2, k3, k4 = jax.random.split(key, 4)
    bound1 = 1.0 / jnp.sqrt(input_size)
    bound2 = 1.0 / jnp.sqrt(hidden)
    w1 = jax.random.uniform(k1, (input_size, hidden), jnp.float32, -bound1, bound1)
    b1 = jax.random.uniform(k2, (1, hidden), jnp.float32, -bound1, bound1)
    w2 = jax.random.uniform(k3, (hidden, num_classes), jnp.float32, -bound2, bound2)
    b2 = jax.random.uniform(k4, (1, num_classes), jnp.float32, -bound2, bound2)
    return w1, b1, w2, b2


if __name__ == "__main__":
    input_size = 32
    hidden = 16
    num_classes = 8

    key = jax.random.PRNGKey(0)
    kx, kxs, kp = jax.random.split(key, 3)
    w1, b1, w2, b2 = init_params(kp, input_size, num_classes, hidden)
    params = pack_params(w1, b1, w2, b2)          # one-time weight pack (hoisted)

    # --- Pallas path: batch large enough for the kernel; splits into 2 tiles. ---
    batch = 256
    x = jax.random.normal(kx, (batch, input_size), jnp.float32)
    out = jax.block_until_ready(simple_nn_forward(x, params))
    ref = jnp.maximum(x @ w1 + b1, 0.0) @ w2 + b2
    assert out.shape == (batch, num_classes)
    # bf16 matmul inputs with f32 accumulation -> bf16-level tolerance.
    assert jnp.allclose(out, ref, atol=5e-2, rtol=5e-2), (
        float(jnp.max(jnp.abs(out - ref))))

    # --- Small-batch fast path (plain fused XLA matmuls, no Pallas launch). ---
    xs = jax.random.normal(kxs, (8, input_size), jnp.float32)
    outs = jax.block_until_ready(simple_nn_forward(xs, params))
    refs = jnp.maximum(xs @ w1 + b1, 0.0) @ w2 + b2
    assert outs.shape == (8, num_classes)
    assert jnp.allclose(outs, refs, atol=1e-5, rtol=1e-5)

    print("KERNEL_OK")
</pallas_src>

<mosaic_0001>
module attributes {stable_mosaic.version = 11 : i64} {
  func.func @mlp_kernel(%arg0: i32, %arg1: memref<128x32xf32, #tpu.memory_space<vmem>>, %arg2: memref<32x128xbf16, #tpu.memory_space<vmem>>, %arg3: memref<1x128xf32, #tpu.memory_space<vmem>>, %arg4: memref<128x8xbf16, #tpu.memory_space<vmem>>, %arg5: memref<1x8xf32, #tpu.memory_space<vmem>>, %arg6: memref<128x8xf32, #tpu.memory_space<vmem>>) attributes {dimension_semantics = [#tpu.dimension_semantics<parallel>], iteration_bounds = array<i64: 2>, scalar_prefetch = 0 : i64, scratch_operands = 0 : i64, tpu.core_type = #tpu.core_type<tc>, window_params = [{transform_indices = @transform_0, window_bounds = array<i64: 128, 32>}, {pipeline_mode = #tpu.pipeline_mode<synchronous>, transform_indices = @transform_1, window_bounds = array<i64: 32, 128>}, {pipeline_mode = #tpu.pipeline_mode<synchronous>, transform_indices = @transform_2, window_bounds = array<i64: 1, 128>}, {pipeline_mode = #tpu.pipeline_mode<synchronous>, transform_indices = @transform_3, window_bounds = array<i64: 128, 8>}, {pipeline_mode = #tpu.pipeline_mode<synchronous>, transform_indices = @transform_4, window_bounds = array<i64: 1, 8>}, {transform_indices = @transform_5, window_bounds = array<i64: 128, 8>}]} {
    %c0 = arith.constant 0 : index
    %c0_0 = arith.constant 0 : index
    %0 = vector.load %arg1[%c0, %c0_0] : memref<128x32xf32, #tpu.memory_space<vmem>>, vector<128x32xf32>
    %1 = arith.truncf %0 : vector<128x32xf32> to vector<128x32xbf16>
    %c0_1 = arith.constant 0 : index
    %c0_2 = arith.constant 0 : index
    %2 = vector.load %arg2[%c0_1, %c0_2] : memref<32x128xbf16, #tpu.memory_space<vmem>>, vector<32x128xbf16>
    %cst = arith.constant dense<0.000000e+00> : vector<128x128xf32>
    %3 = tpu.matmul %1, %2, %cst {dimension_numbers = #tpu.dot_dimension_numbers<[1], [0], [0], [1], [0, 0, 1, 1], [], []>} : vector<128x32xbf16>, vector<32x128xbf16>, vector<128x128xf32> -> vector<128x128xf32>
    %c0_3 = arith.constant 0 : index
    %c0_4 = arith.constant 0 : index
    %4 = vector.load %arg3[%c0_3, %c0_4] : memref<1x128xf32, #tpu.memory_space<vmem>>, vector<1x128xf32>
    %5 = vector.broadcast %4 : vector<1x128xf32> to vector<128x128xf32>
    %6 = arith.addf %3, %5 : vector<128x128xf32>
    %cst_5 = arith.constant 0.000000e+00 : f32
    %7 = vector.broadcast %cst_5 : f32 to vector<128x128xf32>
    %8 = arith.maximumf %6, %7 : vector<128x128xf32>
    %9 = arith.truncf %8 : vector<128x128xf32> to vector<128x128xbf16>
    %c0_6 = arith.constant 0 : index
    %c0_7 = arith.constant 0 : index
    %10 = vector.load %arg4[%c0_6, %c0_7] : memref<128x8xbf16, #tpu.memory_space<vmem>>, vector<128x8xbf16>
    %cst_8 = arith.constant dense<0.000000e+00> : vector<128x8xf32>
    %11 = tpu.matmul %9, %10, %cst_8 {dimension_numbers = #tpu.dot_dimension_numbers<[1], [0], [0], [1], [0, 0, 1, 1], [], []>} : vector<128x128xbf16>, vector<128x8xbf16>, vector<128x8xf32> -> vector<128x8xf32>
    %c0_9 = arith.constant 0 : index
    %c0_10 = arith.constant 0 : index
    %12 = vector.load %arg5[%c0_9, %c0_10] : memref<1x8xf32, #tpu.memory_space<vmem>>, vector<1x8xf32>
    %13 = vector.broadcast %12 : vector<1x8xf32> to vector<128x8xf32>
    %14 = arith.addf %11, %13 : vector<128x8xf32>
    %c0_11 = arith.constant 0 : index
    %c0_12 = arith.constant 0 : index
    %15 = vector.load %arg6[%c0_11, %c0_12] : memref<128x8xf32, #tpu.memory_space<vmem>>, vector<128x8xf32>
    tpu.vector_store %arg6[%c0_11, %c0_12], %14 {strides = array<i32>} : memref<128x8xf32, #tpu.memory_space<vmem>>, vector<128x8xf32>,
    return
  }
  func.func @transform_0(%arg0: i32) -> (i32, i32) {
    %c0_i32 = arith.constant 0 : i32
    %c0_i32_0 = arith.constant 0 : i32
    return %arg0, %c0_i32 : i32, i32
  }
  func.func @transform_1(%arg0: i32) -> (i32, i32) {
    %c0_i32 = arith.constant 0 : i32
    %c0_i32_0 = arith.constant 0 : i32
    %c0_i32_1 = arith.constant 0 : i32
    return %c0_i32, %c0_i32_0 : i32, i32
  }
  func.func @transform_2(%arg0: i32) -> (i32, i32) {
    %c0_i32 = arith.constant 0 : i32
    %c0_i32_0 = arith.constant 0 : i32
    %c0_i32_1 = arith.constant 0 : i32
    return %c0_i32, %c0_i32_0 : i32, i32
  }
  func.func @transform_3(%arg0: i32) -> (i32, i32) {
    %c0_i32 = arith.constant 0 : i32
    %c0_i32_0 = arith.constant 0 : i32
    %c0_i32_1 = arith.constant 0 : i32
    return %c0_i32, %c0_i32_0 : i32, i32
  }
  func.func @transform_4(%arg0: i32) -> (i32, i32) {
    %c0_i32 = arith.constant 0 : i32
    %c0_i32_0 = arith.constant 0 : i32
    %c0_i32_1 = arith.constant 0 : i32
    return %c0_i32, %c0_i32_0 : i32, i32
  }
  func.func @transform_5(%arg0: i32) -> (i32, i32) {
    %c0_i32 = arith.constant 0 : i32
    %c0_i32_0 = arith.constant 0 : i32
    return %arg0, %c0_i32 : i32, i32
  }
}

</mosaic_0001>

<bundles_post_ra>
// kernel: tpu_custom_call.1
= control target key start
LH: loop header
LB: loop body
LE: loop exit
PB: predicated region body
PF: predicated region fallthrough
CT: control target
= control target key end

     0   :  { %s688_s18 = smov 0   ;;  %s808_s0 = inlined_call_operand.vmem [shape: f32[256,32], index: 0, kind: input, shape index: {}]   ;;  %s809_s1 = inlined_call_operand.vmem [shape: bf16[32,128], index: 1, kind: input, shape index: {}]   ;;  %s810_s2 = inlined_call_operand.vmem [shape: f32[1,128], index: 2, kind: input, shape index: {}]   ;;  %s811_s3 = inlined_call_operand.vmem [shape: bf16[128,8], index: 3, kind: input, shape index: {}]   ;;  %s812_s4 = inlined_call_operand.vmem [shape: f32[1,8], index: 4, kind: input, shape index: {}]   ;;  %s813_s5 = inlined_call_operand.vmem [shape: f32[256,8], index: 5, kind: output, shape index: {}]  }
   0x1 LB: > { %s561_s19 = sadd.s32 4294967295, %s656_s18   ;;  %p565_p0 = scmp.ge.s32.totalorder %s656_s18, 1  ;;  %s656_s18 = sphi %s688_s18, %s15_s18  }
   0x2   : > { %p188_p1 = scmp.lt.s32.totalorder %s656_s18, 3 }
   0x4   : > { %p189_p2 = pnand %p565_p0, %p188_p1 }
   0x5   : > { %s566_s22 = sshll.u32 (!%p189_p2), %s561_s19, 4 }
   0x6   : > { %192 = sbr.rel (%p189_p2) target bundleno = 414 (0x19e), region = 40  ;;  %p217_p3 = scmp.lt.s32.totalorder (!%p189_p2), %s566_s22, 31 }
   0xb   : > { %v621_v0 = vld [vmem:[%s809_s1 + $0x8] sm:$0xff]  ;;  %v620_v1 = vld [vmem:[%s809_s1] sm:$0xff]  ;;  %s815_s22 = smov (!%p217_p3, %s566_s22), 31  ;;  %vm273_vm0 = vcmask 261120   ;;  %v629_v14 = vld [vmem:[%s811_s3 + $0x38] sm:$0xff]  ;;  %vm488_vm1 = vcmask 64512  }
   0xc   : > { %304 = vmatpush.bf16.msra.mxu0 %v621_v0  ;;  %630 = vmatpush.bf16.msra.mxu3 %v621_v0  ;;  %s567_s25 = sshll.u32 %s815_s22, 3  ;;  %v628_v15 = vld [vmem:[%s811_s3 + $0x30] sm:$0xff]  ;;  %v627_v16 = vld [vmem:[%s811_s3 + $0x28] sm:$0xff]  ;;  %v626_v22 = vld [vmem:[%s811_s3 + $0x20] sm:$0xff] }
   0xd   : > { %s710_s28 = scalar_lea.vmem %s808_s0, %s567_s25  ;;  %439 = vmatpush.bf16.msra.mxu1 %v629_v14  ;;  %632 = vmatpush.bf16.msra.mxu2 %v629_v14  ;;  %v625_v30 = vld [vmem:[%s811_s3 + $0x18] sm:$0xff]  ;;  %v624_v31 = vld [vmem:[%s811_s3 + $0x10] sm:$0xff]  ;;  %v623_v32 = vld [vmem:[%s811_s3 + $0x8] sm:$0xff]  ;;  %s771_s29 = scalar_lea.vmem %s813_s5, %s567_s25 }
   0xe   : > { %v229_v2 = vld [vmem:[%s710_s28] sm:$0xff]  ;;  %v230_v3 = vld [vmem:[%s710_s28 + $0x8] sm:$0xff]  ;;  %v231_v5 = vld [vmem:[%s710_s28 + $0x10] sm:$0xff] }
   0xf   : > { %v245_v4 = vpack.c.bf16 %v230_v3, %v229_v2  ;;  %v232_v6 = vld [vmem:[%s710_s28 + $0x18] sm:$0xff]  ;;  %v233_v8 = vld [vmem:[%s710_s28 + $0x20] sm:$0xff]  ;;  %v234_v9 = vld [vmem:[%s710_s28 + $0x28] sm:$0xff] }
  0x10   : > { %305 = vmatpush.bf16.msra.mxu0 %v620_v1  ;;  %631 = vmatpush.bf16.msra.mxu3 %v620_v1  ;;  %v246_v7 = vpack.c.bf16 %v232_v6, %v231_v5  ;;  %v247_v10 = vpack.c.bf16 %v234_v9, %v233_v8  ;;  %v239_v11 = vld [vmem:[%s710_s28 + $0x50] sm:$0xff]  ;;  %v240_v12 = vld [vmem:[%s710_s28 + $0x58] sm:$0xff]  ;;  %v241_v19 = vld [vmem:[%s710_s28 + $0x60] sm:$0xff] }
  0x11   : > { %v250_v13 = vpack.c.bf16 %v240_v12, %v239_v11  ;;  %440 = vmatpush.bf16.msra.mxu1 %v628_v15  ;;  %633 = vmatpush.bf16.msra.mxu2 %v628_v15  ;;  %v235_v17 = vld [vmem:[%s710_s28 + $0x30] sm:$0xff]  ;;  %v236_v18 = vld [vmem:[%s710_s28 + $0x38] sm:$0xff]  ;;  %v242_v20 = vld [vmem:[%s710_s28 + $0x68] sm:$0xff] }
  0x12   : > { %v248_v21 = vpack.c.bf16 %v236_v18, %v235_v17  ;;  %v251_v23 = vpack.c.bf16 %v242_v20, %v241_v19  ;;  %v237_v24 = vld [vmem:[%s710_s28 + $0x40] sm:$0xff]  ;;  %v238_v25 = vld [vmem:[%s710_s28 + $0x48] sm:$0xff]  ;;  %v243_v26 = vld [vmem:[%s710_s28 + $0x70] sm:$0xff] }
  0x13   : > { %578 = vmatmul.msk.bf16.vlgmr.msra.gmra.mxu0 %vm273_vm0, %v245_v4  ;;  %583 = vmatmul.msk.bf16.vlgmr.msra.gmra.mxu3 %vm273_vm0, %v250_v13  ;;  %v244_v27 = vld [vmem:[%s710_s28 + $0x78] sm:$0xff]  ;;  %v249_v28 = vpack.c.bf16 %v238_v25, %v237_v24  ;;  %v622_v33 = vld [vmem:[%s811_s3] sm:$0xff] }
  0x14   : > { %v252_v29 = vpack.c.bf16 %v244_v27, %v243_v26  ;;  %v648_v35 = vld [vmem:[%s810_s2] ss:$0 sm:$0xff] }
  0x15   : > { %441 = vmatpush.bf16.msra.mxu1 %v627_v16  ;;  %634 = vmatpush.bf16.msra.mxu2 %v627_v16  ;;  %v649_v27 = vld [vmem:[%s812_s4] ss:$0 sm:$0xff] }
  0x19   : > { %442 = vmatpush.bf16.msra.mxu1 %v626_v22  ;;  %635 = vmatpush.bf16.msra.mxu2 %v626_v22 }
  0x1d   : > { %443 = vmatpush.bf16.msra.mxu1 %v625_v30  ;;  %636 = vmatpush.bf16.msra.mxu2 %v625_v30 }
  0x21   : > { %444 = vmatpush.bf16.msra.mxu1 %v624_v31  ;;  %637 = vmatpush.bf16.msra.mxu2 %v624_v31 }
  0x23   : > { %579 = vmatmul.msk.bf16.gmra.mxu0 %vm273_vm0, %v246_v7  ;;  %584 = vmatmul.msk.bf16.gmra.mxu3 %vm273_vm0, %v251_v23 }
  0x25   : > { %445 = vmatpush.bf16.msra.mxu1 %v623_v32  ;;  %638 = vmatpush.bf16.msra.mxu2 %v623_v32 }
  0x29   : > { %446 = vmatpush.bf16.msra.mxu1 %v622_v33  ;;  %639 = vmatpush.bf16.msra.mxu2 %v622_v33 }
  0x33   : > { %580 = vmatmul.msk.bf16.gmra.mxu0 %vm273_vm0, %v247_v10  ;;  %585 = vmatmul.msk.bf16.gmra.mxu3 %vm273_vm0, %v252_v29 }
  0x43   : > { %581 = vmatmul.msk.bf16.gmra.mxu0 %vm273_vm0, %v248_v21 }
  0x53   : > { %582 = vmatmul.msk.bf16.gmra.mxu0 %vm273_vm0, %v249_v28 }
  0x90   : > { %v307_v34 = vpop.f32.mrf.mxu0 }
  0x91   : > { %v308_v36 = vadd.f32 %v648_v35, %v307_v34 }
  0x93   : > { %v347_v39 = vmax.f32 %v308_v36, 0.0 }
  0x96   : > { %v332_v0 = vpop.f32.mrf.mxu3 }
  0x97   : > { %v333_v9 = vadd.f32 %v648_v35, %v332_v0 }
  0x98   : > { %v309_v37 = vpop.f32.mrf.mxu0 }
  0x99   : > { %v310_v38 = vadd.f32 %v648_v35, %v309_v37  ;;  %v357_v11 = vmax.f32 %v333_v9, 0.0 }
  0x9b   : > { %v348_v40 = vmax.f32 %v310_v38, 0.0 }
  0x9d   : > { %v363_v41 = vpack.c.bf16 %v348_v40, %v347_v39 }
  0x9e   : > { %v334_v4 = vpop.f32.mrf.mxu3 }
  0x9f   : > { %447 = vmatmul.bf16.vlgmr.msra.gmra.mxu1 %v363_v41  ;;  %v335_v10 = vadd.f32 %v648_v35, %v334_v4 }
  0xa0   : > { %v312_v42 = vpop.f32.mrf.mxu0 }
  0xa1   : > { %v313_v43 = vadd.f32 %v648_v35, %v312_v42  ;;  %v358_v12 = vmax.f32 %v335_v10, 0.0 }
  0xa3   : > { %v349_v46 = vmax.f32 %v313_v43, 0.0  ;;  %v368_v13 = vpack.c.bf16 %v358_v12, %v357_v11 }
  0xa6   : > { %v337_v8 = vpop.f32.mrf.mxu3 }
  0xa7   : > { %v338_v15 = vadd.f32 %v648_v35, %v337_v8 }
  0xa8   : > { %v314_v44 = vpop.f32.mrf.mxu0 }
  0xa9   : > { %v315_v45 = vadd.f32 %v648_v35, %v314_v44  ;;  %v359_v18 = vmax.f32 %v338_v15, 0.0 }
  0xab   : > { %v350_v47 = vmax.f32 %v315_v45, 0.0 }
  0xad   : > { %v364_v48 = vpack.c.bf16 %v350_v47, %v349_v46 }
  0xae   : > { %v339_v14 = vpop.f32.mrf.mxu3 }
  0xaf   : > { %452 = vmatmul.bf16.gmra.mxu1 %v364_v48  ;;  %v340_v16 = vadd.f32 %v648_v35, %v339_v14 }
  0xb0   : > { %v317_v49 = vpop.f32.mrf.mxu0 }
  0xb1   : > { %v318_v50 = vadd.f32 %v648_v35, %v317_v49  ;;  %v360_v19 = vmax.f32 %v340_v16, 0.0 }
  0xb3   : > { %v351_v53 = vmax.f32 %v318_v50, 0.0  ;;  %v369_v20 = vpack.c.bf16 %v360_v19, %v359_v18 }
  0xb6   : > { %v342_v17 = vpop.f32.mrf.mxu3 }
  0xb7   : > { %v343_v22 = vadd.f32 %v648_v35, %v342_v17 }
  0xb8   : > { %v319_v51 = vpop.f32.mrf.mxu0 }
  0xb9   : > { %v320_v52 = vadd.f32 %v648_v35, %v319_v51  ;;  %v361_v24 = vmax.f32 %v343_v22, 0.0 }
  0xbb   : > { %v352_v54 = vmax.f32 %v320_v52, 0.0 }
  0xbd   : > { %v365_v55 = vpack.c.bf16 %v352_v54, %v351_v53 }
  0xbe   : > { %v344_v21 = vpop.f32.mrf.mxu3 }
  0xbf   : > { %457 = vmatmul.bf16.gmra.mxu1 %v365_v55  ;;  %v345_v23 = vadd.f32 %v648_v35, %v344_v21 }
  0xc0   : > { %v322_v56 = vpop.f32.mrf.mxu0 }
  0xc1   : > { %v323_v57 = vadd.f32 %v648_v35, %v322_v56  ;;  %v362_v25 = vmax.f32 %v345_v23, 0.0 }
  0xc3   : > { %v353_v60 = vmax.f32 %v323_v57, 0.0  ;;  %v370_v26 = vpack.c.bf16 %v362_v25, %v361_v24 }
  0xc8   : > { %v324_v58 = vpop.f32.mrf.mxu0 }
  0xc9   : > { %v325_v59 = vadd.f32 %v648_v35, %v324_v58 }
  0xcb   : > { %v354_v61 = vmax.f32 %v325_v59, 0.0 }
  0xcd   : > { %v366_v62 = vpack.c.bf16 %v354_v61, %v353_v60 }
  0xcf   : > { %462 = vmatmul.bf16.gmra.mxu1 %v366_v62 }
  0xd0   : > { %v327_v63 = vpop.f32.mrf.mxu0 }
  0xd1   : > { %v328_v1 = vadd.f32 %v648_v35, %v327_v63 }
  0xd3   : > { %v355_v5 = vmax.f32 %v328_v1, 0.0 }
  0xd8   : > { %v329_v2 = vpop.f32.mrf.mxu0 }
  0xd9   : > { %v330_v3 = vadd.f32 %v648_v35, %v329_v2 }
  0xdb   : > { %v356_v6 = vmax.f32 %v330_v3, 0.0 }
  0xdd   : > { %v367_v7 = vpack.c.bf16 %v356_v6, %v355_v5 }
  0xdf   : > { %467 = vmatmul.bf16.vlgmr.msra.gmra.mxu2 %v367_v7 }
  0xef   : > { %472 = vmatmul.bf16.gmra.mxu2 %v368_v13 }
  0xff   : > { %477 = vmatmul.bf16.gmra.mxu2 %v369_v20 }
 0x10f   : > { %482 = vmatmul.bf16.gmra.mxu2 %v370_v26 }
 0x11c   : > { %v448_v28 = vpop.f32.mrf.mxu1 }
 0x11d   : > { %v449_v29 = vadd.f32 %v649_v27, %v448_v28 }
 0x11f   : > { %489 = vst.msk [vmem:[%s771_s29] sm:$0xff] %vm488_vm1, %v449_v29 }
 0x124   : > { %v450_v30 = vpop.f32.mrf.mxu1 }
 0x125   : > { %v451_v31 = vadd.f32 %v649_v27, %v450_v30 }
 0x127   : > { %490 = vst.msk [vmem:[%s771_s29 + $0x8] sm:$0xff] %vm488_vm1, %v451_v31 }
 0x12c   : > { %v453_v32 = vpop.f32.mrf.mxu1 }
 0x12d   : > { %v454_v33 = vadd.f32 %v649_v27, %v453_v32 }
 0x12f   : > { %491 = vst.msk [vmem:[%s771_s29 + $0x10] sm:$0xff] %vm488_vm1, %v454_v33 }
 0x134   : > { %v455_v34 = vpop.f32.mrf.mxu1 }
 0x135   : > { %v456_v35 = vadd.f32 %v649_v27, %v455_v34 }
 0x137   : > { %492 = vst.msk [vmem:[%s771_s29 + $0x18] sm:$0xff] %vm488_vm1, %v456_v35 }
 0x13c   : > { %v458_v36 = vpop.f32.mrf.mxu1 }
 0x13d   : > { %v459_v37 = vadd.f32 %v649_v27, %v458_v36 }
 0x13f   : > { %493 = vst.msk [vmem:[%s771_s29 + $0x20] sm:$0xff] %vm488_vm1, %v459_v37 }
 0x144   : > { %v460_v38 = vpop.f32.mrf.mxu1 }
 0x145   : > { %v461_v39 = vadd.f32 %v649_v27, %v460_v38 }
 0x147   : > { %494 = vst.msk [vmem:[%s771_s29 + $0x28] sm:$0xff] %vm488_vm1, %v461_v39 }
 0x14c   : > { %v463_v40 = vpop.f32.mrf.mxu1 }
 0x14d   : > { %v464_v41 = vadd.f32 %v649_v27, %v463_v40 }
 0x14f   : > { %495 = vst.msk [vmem:[%s771_s29 + $0x30] sm:$0xff] %vm488_vm1, %v464_v41 }
 0x154   : > { %v465_v42 = vpop.f32.mrf.mxu1 }
 0x155   : > { %v466_v43 = vadd.f32 %v649_v27, %v465_v42 }
 0x157   : > { %496 = vst.msk [vmem:[%s771_s29 + $0x38] sm:$0xff] %vm488_vm1, %v466_v43 }
 0x162   : > { %v468_v44 = vpop.f32.mrf.mxu2 }
 0x163   : > { %v469_v45 = vadd.f32 %v649_v27, %v468_v44 }
 0x165   : > { %497 = vst.msk [vmem:[%s771_s29 + $0x40] sm:$0xff] %vm488_vm1, %v469_v45 }
 0x16a   : > { %v470_v46 = vpop.f32.mrf.mxu2 }
 0x16b   : > { %v471_v47 = vadd.f32 %v649_v27, %v470_v46 }
 0x16d   : > { %498 = vst.msk [vmem:[%s771_s29 + $0x48] sm:$0xff] %vm488_vm1, %v471_v47 }
 0x172   : > { %v473_v48 = vpop.f32.mrf.mxu2 }
 0x173   : > { %v474_v49 = vadd.f32 %v649_v27, %v473_v48 }
 0x175   : > { %499 = vst.msk [vmem:[%s771_s29 + $0x50] sm:$0xff] %vm488_vm1, %v474_v49 }
 0x17a   : > { %v475_v50 = vpop.f32.mrf.mxu2 }
 0x17b   : > { %v476_v51 = vadd.f32 %v649_v27, %v475_v50 }
 0x17d   : > { %500 = vst.msk [vmem:[%s771_s29 + $0x58] sm:$0xff] %vm488_vm1, %v476_v51 }
 0x182   : > { %v478_v52 = vpop.f32.mrf.mxu2 }
 0x183   : > { %v479_v53 = vadd.f32 %v649_v27, %v478_v52 }
 0x185   : > { %501 = vst.msk [vmem:[%s771_s29 + $0x60] sm:$0xff] %vm488_vm1, %v479_v53 }
 0x18a   : > { %v480_v54 = vpop.f32.mrf.mxu2 }
 0x18b   : > { %v481_v55 = vadd.f32 %v649_v27, %v480_v54 }
 0x18d   : > { %502 = vst.msk [vmem:[%s771_s29 + $0x68] sm:$0xff] %vm488_vm1, %v481_v55 }
 0x192   : > { %v483_v56 = vpop.f32.mrf.mxu2 }
 0x193   : > { %v484_v57 = vadd.f32 %v649_v27, %v483_v56 }
 0x195   : > { %503 = vst.msk [vmem:[%s771_s29 + $0x70] sm:$0xff] %vm488_vm1, %v484_v57 }
 0x19a   : > { %v485_v58 = vpop.f32.mrf.mxu2 }
 0x19b   : > { %v486_v59 = vadd.f32 %v649_v27, %v485_v58 }
 0x19d   : > { %504 = vst.msk [vmem:[%s771_s29 + $0x78] sm:$0xff] %vm488_vm1, %v486_v59 }
 0x19e PF: > { %s15_s18 = sadd.s32 1, %s656_s18  }
 0x19f   : > { %p12_p4 = scmp.ge.s32.totalorder %s15_s18, 4  }
 0x1a1   :  { %14 = sbr.rel (!%p12_p4) target bundleno = 1 (0x1), region = 70 }

</bundles_post_ra>
